<compile_context>
chip_gen: v7x
topology: tpu7x:2x2x1
jax: 0.10.0
libtpu: 0.0.40
codegen_flags: <defaults>
</compile_context>

<pallas_src>
import functools

import jax
import jax.numpy as jnp
from jax.experimental import pallas as pl
from jax.experimental.pallas import tpu as pltpu


def _round_up(x, m):
    return ((x + m - 1) // m) * m


def ae_encoder_kernel(x_ref, w1_ref, b1_ref, w23_ref, b23_ref, o_ref):
    # Two MXU matmuls + f32 bias adds + f32 tanh (EUP), all on one resident tile.
    x = x_ref[...]                                                    # f32 [bb, d0]
    h = jnp.tanh(
        jnp.dot(x, w1_ref[...], preferred_element_type=jnp.float32) + b1_ref[...]
    )                                                                 # f32 [bb, dh]
    o = jnp.tanh(
        jnp.dot(h, w23_ref[...], preferred_element_type=jnp.float32) + b23_ref[...]
    )                                                                 # f32 [bb, dout]
    o_ref[...] = o.astype(o_ref.dtype)


def prepare_params(params):
    """One-time weight prep, hoisted out of the per-call path.

    Layer 2 and layer 3 have no nonlinearity between them, so they fuse exactly:
        W23 = W2 @ W3,   b23 = b2 @ W3 + b3.
    Everything stays f32: the kernel is HBM-bound, bf16 weights buy no time here.
    """
    w23 = params["w2"] @ params["w3"]           # [dh, dout]
    b23 = params["b2"] @ params["w3"] + params["b3"]   # [1, dout]
    return {"w1": params["w1"], "b1": params["b1"], "w23": w23, "b23": b23}


@functools.partial(jax.jit, static_argnames=("block_b",))
def ae_encoder(x, prepared, *, block_b=2048):
    """x: [B, dim0] float32. prepared: output of prepare_params (weights [in, out])."""
    B, d0 = x.shape
    w1, b1 = prepared["w1"], prepared["b1"]
    w23, b23 = prepared["w23"], prepared["b23"]
    dh = w1.shape[1]
    dout = w23.shape[1]

    # --- batch tiling: big row tile (amortize per-step overhead), sublane-aligned ---
    bb = min(block_b, _round_up(B, 8))
    bb = _round_up(bb, 8)
    num_steps = pl.cdiv(B, bb)
    # v7x has 2 TensorCores: when the batch is large enough, make sure the grid has
    # at least 2 "parallel" steps so both cores get work.
    if num_steps < 2 and B >= 1024:
        bb = _round_up(pl.cdiv(B, 2), 8)
        num_steps = pl.cdiv(B, bb)

    grid = (num_steps,)

    def rep2(shape):
        # Grid-invariant operand (weights / biases): same block every step.
        return pl.BlockSpec(shape, lambda i: (0, 0))

    out = pl.pallas_call(
        ae_encoder_kernel,
        out_shape=jax.ShapeDtypeStruct((B, dout), jnp.float32),
        grid_spec=pl.GridSpec(
            grid=grid,
            in_specs=[
                pl.BlockSpec((bb, d0), lambda i: (i, 0)),   # x tile over batch (f32)
                rep2((d0, dh)),                             # W1            (f32)
                rep2((1, dh)),                              # b1            (f32)
                rep2((dh, dout)),                           # W2@W3 fused   (f32)
                rep2((1, dout)),                            # fused bias    (f32)
            ],
            out_specs=pl.BlockSpec((bb, dout), lambda i: (i, 0)),
        ),
        compiler_params=pltpu.CompilerParams(
            # Batch axis is embarrassingly parallel; partial last block is masked by
            # Pallas, so no wrapper-level pad/slice is needed. Tile footprint
            # (bb<=2048 rows x tiny feature dims, f32) stays far below the scoped
            # VMEM default on every generation, including v7x's 64 MiB part.
            dimension_semantics=("parallel",),
        ),
    )(x, w1, b1, w23, b23)

    return out


def init_params(key, dim0, dim1):
    """nn.Linear-style init (uniform +-1/sqrt(fan_in)); weights stored as [in, out]."""
    dh = dim0 // 2
    ks = jax.random.split(key, 6)

    def lin(kw, kb, fan_in, fan_out):
        bound = 1.0 / jnp.sqrt(fan_in)
        w = jax.random.uniform(kw, (fan_in, fan_out), jnp.float32, -bound, bound)
        b = jax.random.uniform(kb, (1, fan_out), jnp.float32, -bound, bound)
        return w, b

    w1, b1 = lin(ks[0], ks[1], dim0, dh)
    w2, b2 = lin(ks[2], ks[3], dh, dh)
    w3, b3 = lin(ks[4], ks[5], dh, dim1)
    return {"w1": w1, "b1": b1, "w2": w2, "b2": b2, "w3": w3, "b3": b3}


def reference(x, p):
    # Unfused f32 reference matching the PyTorch module exactly.
    h = jnp.tanh(x @ p["w1"] + p["b1"])
    h = h @ p["w2"] + p["b2"]
    return jnp.tanh(h @ p["w3"] + p["b3"])


if __name__ == "__main__":
    key = jax.random.PRNGKey(0)
    dim = [64, 16]          # dim[0]=input features, dim[1]=latent size
    batch = 16

    kx, kp = jax.random.split(key)
    x = jax.random.normal(kx, (batch, dim[0]), jnp.float32)
    params = init_params(kp, dim[0], dim[1])

    prepared = prepare_params(params)   # one-time: fuse layer2+layer3 weights

    out = ae_encoder(x, prepared)
    out = jax.block_until_ready(out)

    ref = reference(x, params)
    assert out.shape == (batch, dim[1]), out.shape
    # f32 end-to-end; tolerance only covers TPU matmul rounding + the w2@w3 pre-fusion.
    assert jnp.allclose(out, ref, atol=2e-2, rtol=2e-2), "mismatch vs reference"

    print("KERNEL_OK")
</pallas_src>

<mosaic_0001>
module attributes {stable_mosaic.version = 11 : i64} {
  func.func @ae_encoder_kernel(%arg0: i32, %arg1: memref<16x64xf32, #tpu.memory_space<vmem>>, %arg2: memref<64x32xf32, #tpu.memory_space<vmem>>, %arg3: memref<1x32xf32, #tpu.memory_space<vmem>>, %arg4: memref<32x16xf32, #tpu.memory_space<vmem>>, %arg5: memref<1x16xf32, #tpu.memory_space<vmem>>, %arg6: memref<16x16xf32, #tpu.memory_space<vmem>>) attributes {dimension_semantics = [#tpu.dimension_semantics<parallel>], iteration_bounds = array<i64: 1>, scalar_prefetch = 0 : i64, scratch_operands = 0 : i64, tpu.core_type = #tpu.core_type<tc>, window_params = [{transform_indices = @transform_0, window_bounds = array<i64: 16, 64>}, {pipeline_mode = #tpu.pipeline_mode<synchronous>, transform_indices = @transform_1, window_bounds = array<i64: 64, 32>}, {pipeline_mode = #tpu.pipeline_mode<synchronous>, transform_indices = @transform_2, window_bounds = array<i64: 1, 32>}, {pipeline_mode = #tpu.pipeline_mode<synchronous>, transform_indices = @transform_3, window_bounds = array<i64: 32, 16>}, {pipeline_mode = #tpu.pipeline_mode<synchronous>, transform_indices = @transform_4, window_bounds = array<i64: 1, 16>}, {transform_indices = @transform_5, window_bounds = array<i64: 16, 16>}]} {
    %c0 = arith.constant 0 : index
    %c0_0 = arith.constant 0 : index
    %0 = vector.load %arg1[%c0, %c0_0] : memref<16x64xf32, #tpu.memory_space<vmem>>, vector<16x64xf32>
    %c0_1 = arith.constant 0 : index
    %c0_2 = arith.constant 0 : index
    %1 = vector.load %arg2[%c0_1, %c0_2] : memref<64x32xf32, #tpu.memory_space<vmem>>, vector<64x32xf32>
    %cst = arith.constant dense<0.000000e+00> : vector<16x32xf32>
    %2 = tpu.matmul %0, %1, %cst {dimension_numbers = #tpu.dot_dimension_numbers<[1], [0], [0], [1], [0, 0, 1, 1], [], []>} : vector<16x64xf32>, vector<64x32xf32>, vector<16x32xf32> -> vector<16x32xf32>
    %c0_3 = arith.constant 0 : index
    %c0_4 = arith.constant 0 : index
    %3 = vector.load %arg3[%c0_3, %c0_4] : memref<1x32xf32, #tpu.memory_space<vmem>>, vector<1x32xf32>
    %4 = vector.broadcast %3 : vector<1x32xf32> to vector<16x32xf32>
    %5 = arith.addf %2, %4 : vector<16x32xf32>
    %6 = math.tanh %5 : vector<16x32xf32>
    %c0_5 = arith.constant 0 : index
    %c0_6 = arith.constant 0 : index
    %7 = vector.load %arg4[%c0_5, %c0_6] : memref<32x16xf32, #tpu.memory_space<vmem>>, vector<32x16xf32>
    %cst_7 = arith.constant dense<0.000000e+00> : vector<16x16xf32>
    %8 = tpu.matmul %6, %7, %cst_7 {dimension_numbers = #tpu.dot_dimension_numbers<[1], [0], [0], [1], [0, 0, 1, 1], [], []>} : vector<16x32xf32>, vector<32x16xf32>, vector<16x16xf32> -> vector<16x16xf32>
    %c0_8 = arith.constant 0 : index
    %c0_9 = arith.constant 0 : index
    %9 = vector.load %arg5[%c0_8, %c0_9] : memref<1x16xf32, #tpu.memory_space<vmem>>, vector<1x16xf32>
    %10 = vector.broadcast %9 : vector<1x16xf32> to vector<16x16xf32>
    %11 = arith.addf %8, %10 : vector<16x16xf32>
    %12 = math.tanh %11 : vector<16x16xf32>
    %c0_10 = arith.constant 0 : index
    %c0_11 = arith.constant 0 : index
    %13 = vector.load %arg6[%c0_10, %c0_11] : memref<16x16xf32, #tpu.memory_space<vmem>>, vector<16x16xf32>
    tpu.vector_store %arg6[%c0_10, %c0_11], %12 {strides = array<i32>} : memref<16x16xf32, #tpu.memory_space<vmem>>, vector<16x16xf32>,
    return
  }
  func.func @transform_0(%arg0: i32) -> (i32, i32) {
    %c0_i32 = arith.constant 0 : i32
    %c0_i32_0 = arith.constant 0 : i32
    return %arg0, %c0_i32 : i32, i32
  }
  func.func @transform_1(%arg0: i32) -> (i32, i32) {
    %c0_i32 = arith.constant 0 : i32
    %c0_i32_0 = arith.constant 0 : i32
    %c0_i32_1 = arith.constant 0 : i32
    return %c0_i32, %c0_i32_0 : i32, i32
  }
  func.func @transform_2(%arg0: i32) -> (i32, i32) {
    %c0_i32 = arith.constant 0 : i32
    %c0_i32_0 = arith.constant 0 : i32
    %c0_i32_1 = arith.constant 0 : i32
    return %c0_i32, %c0_i32_0 : i32, i32
  }
  func.func @transform_3(%arg0: i32) -> (i32, i32) {
    %c0_i32 = arith.constant 0 : i32
    %c0_i32_0 = arith.constant 0 : i32
    %c0_i32_1 = arith.constant 0 : i32
    return %c0_i32, %c0_i32_0 : i32, i32
  }
  func.func @transform_4(%arg0: i32) -> (i32, i32) {
    %c0_i32 = arith.constant 0 : i32
    %c0_i32_0 = arith.constant 0 : i32
    %c0_i32_1 = arith.constant 0 : i32
    return %c0_i32, %c0_i32_0 : i32, i32
  }
  func.func @transform_5(%arg0: i32) -> (i32, i32) {
    %c0_i32 = arith.constant 0 : i32
    %c0_i32_0 = arith.constant 0 : i32
    return %arg0, %c0_i32 : i32, i32
  }
}

</mosaic_0001>

<bundles_post_ra>
// kernel: ae_encoder.1
= control target key start
LH: loop header
LB: loop body
LE: loop exit
PB: predicated region body
PF: predicated region fallthrough
CT: control target
= control target key end

     0   :  { %vm38_vm0 = vcmask 523264   ;;  %s442_s0 = inlined_call_operand.vmem [shape: f32[16,64], index: 0, kind: input, shape index: {}]   ;;  %s443_s1 = inlined_call_operand.vmem [shape: f32[64,32], index: 1, kind: input, shape index: {}]   ;;  %s444_s2 = inlined_call_operand.vmem [shape: f32[1,32], index: 2, kind: input, shape index: {}]   ;;  %s445_s3 = inlined_call_operand.vmem [shape: f32[32,16], index: 3, kind: input, shape index: {}]   ;;  %s446_s4 = inlined_call_operand.vmem [shape: f32[1,16], index: 4, kind: input, shape index: {}]   ;;  %s447_s5 = inlined_call_operand.hbm [shape: f32[16,16], index: 5, kind: output, shape index: {}]  }
   0x1   :  { %v23_v0 = vld [vmem:[%s443_s1] sm:$0xff]  ;;  %v24_v1 = vld [vmem:[%s443_s1 + $0x8] sm:$0xff]  ;;  %v25_v2 = vld [vmem:[%s443_s1 + $0x10] sm:$0xff] }
   0x2   :  { %v288_v3 = vpack.c.bf16 %v24_v1, %v23_v0  ;;  %v26_v4 = vld [vmem:[%s443_s1 + $0x18] sm:$0xff]  ;;  %v27_v6 = vld [vmem:[%s443_s1 + $0x20] sm:$0xff]  ;;  %v28_v7 = vld [vmem:[%s443_s1 + $0x28] sm:$0xff] }
   0x3   :  { %v292_v5 = vpack.c.bf16 %v26_v4, %v25_v2  ;;  %v21_v8 = vld [vmem:[%s442_s0] sm:$0xff] }
   0x4   :  { %289 = vmatprep.subr.bf16.mxu0 %v288_v3  ;;  %274 = vmatprep.mubr.msk.f32.mxu0 %vm38_vm0, %v21_v8 }
   0x5   :  { %10 = vsyncpa [#allocation3], 0  ;;  %291 = vmatpush3.bf16.msra.mxu0 %v288_v3  ;;  %v296_v9 = vpack.c.bf16 %v28_v7, %v27_v6  ;;  %v29_v10 = vld [vmem:[%s443_s1 + $0x30] sm:$0xff]  ;;  %v30_v11 = vld [vmem:[%s443_s1 + $0x38] sm:$0xff]  ;;  %vm133_vm1 = vcmask 261120   ;;  %vm217_vm2 = vcmask 130048  }
   0x6   :  { %293 = vmatprep.subr.bf16.mxu0 %v292_v5  ;;  %v300_v12 = vpack.c.bf16 %v30_v11, %v29_v10  ;;  %v22_v13 = vld [vmem:[%s442_s0 + $0x8] sm:$0xff]  ;;  %v122_v14 = vld [vmem:[%s445_s3] sm:$0xff]  ;;  %v124_v16 = vld [vmem:[%s445_s3 + $0x10] sm:$0xff] }
   0x7   :  { %v123_v15 = vld [vmem:[%s445_s3 + $0x8] sm:$0xff]  ;;  %v125_v18 = vld [vmem:[%s445_s3 + $0x18] sm:$0xff]  ;;  %v236_v20 = vld [vmem:[%s444_s2] ss:$0 sm:$0xff]  ;;  %s347_s2 = smov [#allocation2]  }
   0x8   :  { %v304_v17 = vpack.c.bf16 %v123_v15, %v122_v14  ;;  %v308_v19 = vpack.c.bf16 %v125_v18, %v124_v16  ;;  %v239_v27 = vld [vmem:[%s446_s4] ss:$0 sm:$0xff]  ;;  %s225_s22 = sshll.u32 %s347_s2, 4  ;;  %s226_s22 = int_to_ptr.vmem [resolvable:$true] %s225_s22 }
   0x9   :  { %295 = vmatpush3.bf16.msra.mxu0 %v292_v5  ;;  %s323_s23 = scalar_lea.vmem %s226_s22, 256  ;;  %p328_p1 = scmp.lt.s32.totalorder %s226_s22, %s226_s22 }
   0xa   :  { %297 = vmatprep.subr.bf16.mxu0 %v296_v9  ;;  %305 = vmatprep.subr.bf16.mxu1 %v304_v17  ;;  %p324_p0 = scmp.ne.s32.totalorder %s226_s22, %s323_s23  ;;  %p329_p2 = scmp.lt.s32.totalorder %s323_s23, %s323_s23 }
   0xb   :  { %307 = vmatpush3.bf16.msra.mxu1 %v304_v17 }
   0xc   :  { %309 = vmatprep.subr.bf16.mxu1 %v308_v19  ;;  %p330_p3 = por %p329_p2, %p328_p1 }
   0xd   :  { %299 = vmatpush3.bf16.msra.mxu0 %v296_v9 }
   0xe   :  { %301 = vmatprep.subr.bf16.mxu0 %v300_v12  ;;  %p331_p4 = pnand %p330_p3, %p324_p0 }
   0xf   :  { %311 = vmatpush3.bf16.msra.mxu1 %v308_v19 }
  0x11   :  { %303 = vmatpush3.bf16.msra.mxu0 %v300_v12 }
  0x14   :  { %275 = vmatmul.mubr.msk.f32.vlgmr.msra.gmra.mrb[0].mxu0 %vm38_vm0, %v22_v13 }
  0xe7   :  { %v276_v21 = vpop.f32.mrb[0].mxu0 }
  0xe8   :  { %v117_v22 = vadd.f32 %v276_v21, %v236_v20  ;;  %v111_v23 = vpop.f32.mrb[1].mxu0 }
  0xe9   :  { %v112_v24 = vadd.f32 %v236_v20, %v111_v23 }
  0xeb   :  { %315 = vtanh.f32 %v112_v24 }
  0xec   :  { %317 = vtanh.f32 %v117_v22 }
  0xf5   :  { %v316_v25 = vpop.eup %315 }
  0xf6   :  { %v318_v26 = vpop.eup %317  ;;  %285 = vmatprep.mubr.msk.f32.mxu1 %vm133_vm1, %v316_v25 }
  0xf7   :  { %286 = vmatmul.mubr.msk.f32.vlgmr.msra.gmra.mrb[0].mxu1 %vm133_vm1, %v318_v26 }
 0x1ca   :  { %v287_v28 = vpop.f32.mrb[0].mxu1 }
 0x1cb   :  { %v212_v29 = vadd.f32 %v287_v28, %v239_v27  ;;  %v206_v30 = vpop.f32.mrb[1].mxu1 }
 0x1cc   :  { %v207_v31 = vadd.f32 %v239_v27, %v206_v30 }
 0x1cd   :  { %319 = vtanh.f32 %v212_v29 }
 0x1ce   :  { %321 = vtanh.f32 %v207_v31 }
 0x1d7   :  { %v320_v32 = vpop.eup %319 }
 0x1d8   :  { %v322_v33 = vpop.eup %321  ;;  %219 = vst.msk [vmem:[#allocation2 + $0x8] sm:$0xff] %vm217_vm2, %v320_v32 }
 0x1d9   :  { %218 = vst.msk [vmem:[#allocation2] sm:$0xff] %vm217_vm2, %v322_v33 }
 0x1da   :  { %334 = shalt.err (!%p331_p4)
}
 0x1db   :  { %s335_s25 = scalar_lea.hbm %s447_s5, 256 }
 0x1dc   :  { %p336_p5 = scmp.ne.s32.totalorder %s447_s5, %s335_s25  ;;  %p339_p6 = scmp.lt.u32.totalorder %s335_s25, %s447_s5 }
 0x1de   :  { %p341_p7 = pnand %p339_p6, %p336_p5 }
 0x1e0   :  { %344 = shalt.err (!%p341_p7)
}
 0x1e1   :  { %s348_s30 = smov 128   ;;  %s349_s6 = smov 8  }
 0x1e2   :  { %231 = dma.vmem_to_hbm [thread:$0]  %s226_s22, 256, %s447_s5, [#allocation3], %s348_s30, %s348_s30, %s349_s6  }
 0x1e3   :  { %345 = dma.done.wait [#allocation3], 256  }
 0x1e4   :  { %346 = vsyncadd [#allocation3], 4294967040 }
 0x1e5   :  { %235 = vsyncpa [#allocation3], 1 }

</bundles_post_ra>
